<compile_context>
chip_gen: v7x
topology: tpu7x:2x2x1
jax: 0.10.0
libtpu: 0.0.40
codegen_flags: <defaults>
</compile_context>

<pallas_src>
import jax
import jax.numpy as jnp
from jax.experimental import pallas as pl
from jax.experimental.pallas import tpu as pltpu


def _round_up(v, m):
    return (v + m - 1) // m * m


def _vmem_capacity_bytes():
    """Generation-aware VMEM capacity (128 MiB on v5e/v6e, 64 MiB on v7x)."""
    try:
        info = pltpu.get_tpu_info()
        for name in ("vmem_capacity_bytes", "vmem_size_bytes", "vmem_bytes"):
            val = getattr(info, name, None)
            if val:
                return int(val)
    except Exception:
        pass
    return 64 * 1024 * 1024  # conservative fallback (v7x per-core VMEM)


# ---------------------------------------------------------------------------
# Kernel A: head-fused projections, single launch, emits fused [P | E] (bf16).
# ---------------------------------------------------------------------------
def make_proj_kernel(Q):
    def proj_kernel(x_ref, kw_ref, vw_ref, qwt_ref, ex_ref, pe_ref):
        f32, bf16 = jnp.float32, jnp.bfloat16
        x = x_ref[...]                                              # (Ns, C) bf16
        xk = jnp.dot(x, kw_ref[...], preferred_element_type=f32)    # (Ns, hidden)
        a = jnp.dot(xk.astype(bf16), qwt_ref[...],
                    preferred_element_type=f32)                     # alpha^T (Ns, Q*H)
        # Target-independent per-column shift: num and den share it, so the
        # softmax ratio is exact; the column max keeps exp() in (0, 1].
        gmax = jnp.max(a, axis=0, keepdims=True)
        e = jnp.exp(a - gmax)                                       # f32, EUP
        xv = jnp.dot(x, vw_ref[...], preferred_element_type=f32)    # (Ns, hidden)
        if Q > 1:
            xv = jnp.tile(xv, (1, Q))                               # (Ns, Q*hidden)
        # per-(q,h) scalar -> per-head lane block (exact 0/1 expansion, bf16 MXU)
        e_rep = jnp.dot(e.astype(bf16), ex_ref[...],
                        preferred_element_type=f32)                 # (Ns, Q*hidden)
        p = (e_rep * xv).astype(bf16)
        pe_ref[...] = jnp.concatenate([p, e.astype(bf16)], axis=1)  # [P | E]
    return proj_kernel


# ---------------------------------------------------------------------------
# Kernel B: acc = mask @ [P|E] (accumulated over source tiles), softmax
# normalization + Q_weight residual + LN0 + MLP(Linear,no bias) + ReLU
# residual + LN1 + sum over queries; lane-dense packed output store.
# ---------------------------------------------------------------------------
def make_block_kernel(Q, H, hidden, tile, k_pack):
    Qh, QH = Q * hidden, Q * H
    f32, bf16 = jnp.float32, jnp.bfloat16

    def kernel(mask_ref, pe_ref, ex_ref, qw_ref, g0_ref, b0_ref, w_ref,
               g1_ref, b1_ref, out_ref, acc_ref):
        s = pl.program_id(1)

        @pl.when(s == 0)
        def _init():
            acc_ref[...] = jnp.zeros_like(acc_ref)

        # fused numerator + denominator: ONE bf16 MXU matmul per (t, s) tile
        acc_ref[...] += jnp.dot(mask_ref[...].astype(bf16), pe_ref[...],
                                preferred_element_type=f32)

        @pl.when(s == pl.num_programs(1) - 1)
        def _epilogue():
            acc = acc_ref[...]
            num = acc[:, :Qh]                                       # (tile, Q*hidden)
            den = acc[:, Qh:]                                       # (tile, Q*H)
            has = den > 0.0          # no-neighbor targets -> all-zero attention
            inv = jnp.where(has,
                            pl.reciprocal(jnp.where(has, den, 1.0), approx=True),
                            0.0)
            inv_rep = jnp.dot(inv.astype(bf16), ex_ref[...],
                              preferred_element_type=f32)           # exact 0/1 expansion
            x = num * inv_rep + qw_ref[...]                         # (tile, Q*hidden)
            if Q > 1:
                x = x.reshape(tile * Q, hidden)

            def layer_norm(z, g, b):
                mu = jnp.mean(z, axis=-1, keepdims=True)
                var = jnp.mean(jnp.square(z - mu), axis=-1, keepdims=True)
                return (z - mu) * jax.lax.rsqrt(var + 1e-5) * g + b

            x0 = layer_norm(x, g0_ref[...], b0_ref[...])
            y = jnp.dot(x0.astype(bf16), w_ref[...],
                        preferred_element_type=f32)                 # MLP: Linear, no bias
            z = layer_norm(x0 + jnp.maximum(y, 0.0), g1_ref[...], b1_ref[...])
            if Q > 1:
                z = jnp.sum(z.reshape(tile, Q, hidden), axis=1)
            # lane-dense store: k_pack target rows packed per 128-lane row
            out_ref[...] = z.reshape(tile // k_pack, k_pack * hidden)
    return kernel


# ---------------------------------------------------------------------------
# Wrapper
# ---------------------------------------------------------------------------
def allset_transformer_block(x_source, nbhd_mask, params, tile_t=512):
    """Forward pass of AllSetTransformerBlock (dropout = 0, eval mode)."""
    f32, bf16 = jnp.float32, jnp.bfloat16
    Nt, Ns = nbhd_mask.shape
    H, C, hd = params["K"].shape
    Q = params["Qw"].shape[1]
    hidden = H * hd
    Qh, QH = Q * hidden, Q * H
    PEw = Qh + QH

    # ---- generation-aware VMEM budget (explicit vmem_limit_bytes) ----------
    vmem_cap = _vmem_capacity_bytes()
    vmem_limit = min((vmem_cap * 3) // 4, 100 * 1024 * 1024)   # ~96 MiB v5e/v6e, ~48 MiB v7x
    budget = vmem_limit - (8 << 20)                            # headroom for compiler scratch

    # ---- head-fused weight layouts (host-side, tiny); bf16 MXU operands ----
    kw = jnp.transpose(params["K"], (1, 0, 2)).reshape(C, hidden).astype(bf16)
    vw = jnp.transpose(params["V"], (1, 0, 2)).reshape(C, hidden).astype(bf16)
    # QwT[h*hd+d, q*H+g] = Qw[h,q,d] * delta(h,g)   (alpha^T = (x@K) @ QwT)
    qwT = jnp.einsum("hqd,hg->hdqg", params["Qw"].astype(f32),
                     jnp.eye(H, dtype=f32)).reshape(hidden, QH).astype(bf16)
    # Ex[q*H+h, q'*hidden+h'*hd+d] = delta(q,q')*delta(h,h')  (0/1: exact in bf16)
    ex = (jnp.eye(Q, dtype=f32)[:, None, :, None, None]
          * jnp.eye(H, dtype=f32)[None, :, None, :, None]
          * jnp.ones((1, 1, 1, 1, hd), f32)).reshape(QH, Qh).astype(bf16)
    # residual Q_weight flattened in (q, head, d) order
    qw_add = jnp.transpose(params["Qw"], (1, 0, 2)).reshape(1, Qh).astype(f32)
    g0 = params["ln0_g"].reshape(1, hidden).astype(f32)
    b0 = params["ln0_b"].reshape(1, hidden).astype(f32)
    g1 = params["ln1_g"].reshape(1, hidden).astype(f32)
    b1 = params["ln1_b"].reshape(1, hidden).astype(f32)
    w_bf = params["W"].astype(bf16)

    # ---- source (contraction) tiling for kernel B ---------------------------
    if Ns * PEw * 2 <= budget // 4:
        tile_s, Ns_pad = Ns, Ns          # [P|E] stays resident (single-buffered)
    else:
        tile_s = 1024                    # multiple of 128 (mask lanes) / 16 (bf16 sublanes)
        Ns_pad = _round_up(Ns, tile_s)
    grid_s = Ns_pad // tile_s

    # ---- target tiling + lane-dense output packing --------------------------
    if hidden < 128 and 128 % hidden == 0:
        k_pack = 128 // hidden           # rows packed per 128-lane output row
    else:
        k_pack = 1
    granule = max(32, 8 * k_pack)        # int8 mask sublanes / packed-out sublanes
    tile = max(granule, min(_round_up(tile_t, granule), _round_up(Nt, granule)))

    def kernel_b_vmem(t):
        mask_b = 2 * t * tile_s                             # int8 stream, 2x buffered
        pe_b = (1 if grid_s == 1 else 2) * tile_s * PEw * 2
        acc_b = t * PEw * 4
        out_b = 2 * t * hidden * 4
        invar = QH * Qh * 2 + Qh * 4 + 4 * hidden * 4 + hidden * hidden * 2
        return mask_b + pe_b + acc_b + out_b + invar

    while tile > granule and kernel_b_vmem(tile) > budget:
        tile = max(granule, _round_up(tile // 2, granule))
    Nt_pad = _round_up(Nt, tile)

    # ---- operand padding / packing (host-side, zero padding is exact) -------
    x_pad = x_source
    if Ns_pad != Ns:
        x_pad = jnp.pad(x_pad, ((0, Ns_pad - Ns), (0, 0)))
    x_bf = x_pad.astype(bf16)
    mask_i8 = (nbhd_mask != 0).astype(jnp.int8)             # int8 stream: 1 B/elem
    if (Nt_pad, Ns_pad) != (Nt, Ns):
        mask_i8 = jnp.pad(mask_i8, ((0, Nt_pad - Nt), (0, Ns_pad - Ns)))

    # ---- Kernel A: single launch, heads fused, fused [P | E] output ---------
    # TODO(synk): tile kernel A over Ns (column-max pre-pass) to lift the
    # residency ceiling for very large n_source_cells (mainly a v7x concern).
    pe = pl.pallas_call(
        make_proj_kernel(Q),
        out_shape=jax.ShapeDtypeStruct((Ns_pad, PEw), bf16),
        grid_spec=pltpu.PrefetchScalarGridSpec(
            num_scalar_prefetch=0, grid=(1,),
            in_specs=[
                pl.BlockSpec((Ns_pad, C), lambda i: (0, 0)),
                pl.BlockSpec((C, hidden), lambda i: (0, 0)),
                pl.BlockSpec((C, hidden), lambda i: (0, 0)),
                pl.BlockSpec((hidden, QH), lambda i: (0, 0)),
                pl.BlockSpec((QH, Qh), lambda i: (0, 0)),
            ],
            out_specs=pl.BlockSpec((Ns_pad, PEw), lambda i: (0, 0))),
        compiler_params=pltpu.CompilerParams(
            dimension_semantics=("arbitrary",),
            vmem_limit_bytes=vmem_limit),
    )(x_bf, kw, vw, qwT, ex)

    # ---- Kernel B: attention + residual + LN0 + MLP + LN1 + sum over q ------
    kernel = make_block_kernel(Q, H, hidden, tile, k_pack)

    def run_block(single_buffer_invariants):
        def inv_spec(shape):
            if single_buffer_invariants:
                return pl.BlockSpec(shape, lambda t, s: (0, 0),
                                    pipeline_mode=pl.Buffered(1))
            return pl.BlockSpec(shape, lambda t, s: (0, 0))

        pe_spec = (inv_spec((tile_s, PEw)) if grid_s == 1 else
                   pl.BlockSpec((tile_s, PEw), lambda t, s: (s, 0)))
        return pl.pallas_call(
            kernel,
            out_shape=jax.ShapeDtypeStruct((Nt_pad // k_pack, k_pack * hidden), f32),
            grid_spec=pltpu.PrefetchScalarGridSpec(
                num_scalar_prefetch=0,
                grid=(Nt_pad // tile, grid_s),
                in_specs=[
                    pl.BlockSpec((tile, tile_s), lambda t, s: (t, s)),  # streamed
                    pe_spec,
                    inv_spec((QH, Qh)),
                    inv_spec((1, Qh)),
                    inv_spec((1, hidden)),
                    inv_spec((1, hidden)),
                    inv_spec((hidden, hidden)),
                    inv_spec((1, hidden)),
                    inv_spec((1, hidden)),
                ],
                out_specs=pl.BlockSpec((tile // k_pack, k_pack * hidden),
                                       lambda t, s: (t, 0)),
                scratch_shapes=[pltpu.VMEM((tile, PEw), f32)]),
            compiler_params=pltpu.CompilerParams(
                dimension_semantics=("parallel", "arbitrary"),
                vmem_limit_bytes=vmem_limit),
        )(mask_i8, pe, ex, qw_add, g0, b0, w_bf, g1, b1)

    try:
        out = run_block(True)
    except Exception:
        # pl.Buffered(1) unsupported on this jax version -> default buffering
        out = run_block(False)

    # packed (Nt_pad//k_pack, k_pack*hidden) -> (Nt, hidden) is a pure view
    return out.reshape(Nt_pad, hidden)[:Nt]


# ---------------------------------------------------------------------------
# Pure-JAX reference (mirrors the PyTorch forward, eval mode)
# ---------------------------------------------------------------------------
def reference(x, mask, p):
    H, C, h = p["K"].shape
    Q = p["Qw"].shape[1]
    hp = jax.lax.Precision.HIGHEST
    xk = jnp.einsum("sc,hcd->hsd", x, p["K"], precision=hp)
    alpha = jnp.einsum("hqd,hsd->hqs", p["Qw"], xk, precision=hp)
    xv = jnp.einsum("sc,hcd->hsd", x, p["V"], precision=hp)
    Nt = mask.shape[0]
    m = (mask > 0.5)[:, None, None, :]
    s = jnp.broadcast_to(alpha[None], (Nt,) + alpha.shape)
    neg = jnp.where(m, s, -1e30)
    rmax = jnp.max(neg, -1, keepdims=True)
    e = jnp.where(m, jnp.exp(neg - rmax), 0.0)
    den = jnp.sum(e, -1, keepdims=True)
    att = e / jnp.where(den > 0.0, den, 1.0)
    msg = jnp.einsum("thqs,hsd->thqd", att, xv, precision=hp) + p["Qw"][None]
    msg = jnp.transpose(msg, (0, 2, 1, 3)).reshape(Nt, Q, H * h)

    def ln(z, g, b):
        mu = z.mean(-1, keepdims=True)
        var = ((z - mu) ** 2).mean(-1, keepdims=True)
        return (z - mu) * jax.lax.rsqrt(var + 1e-5) * g + b

    x0 = ln(msg, p["ln0_g"], p["ln0_b"])
    y = jnp.maximum(jnp.einsum("tqc,cd->tqd", x0, p["W"], precision=hp), 0.0)
    z1 = ln(x0 + y, p["ln1_g"], p["ln1_b"])
    return z1.sum(1)


def xavier_uniform(key, shape, gain):
    fan_in = shape[1] * (shape[2] if len(shape) > 2 else 1)
    fan_out = shape[0] * (shape[2] if len(shape) > 2 else 1)
    a = gain * (6.0 / (fan_in + fan_out)) ** 0.5
    return jax.random.uniform(key, shape, jnp.float32, -a, a)


if __name__ == "__main__":
    # small shapes: 16 source cells, 16 target cells, in_channels=8,
    # heads=4, hidden_channels=32 (per-head h=8), number_queries=1
    Ns, Nt, C, H, hidden, Q = 16, 16, 8, 4, 32, 1
    h = hidden // H
    gain = 1.414

    key = jax.random.PRNGKey(0)
    kx, km, k1, k2, k3, k4 = jax.random.split(key, 6)

    x_source = jax.random.normal(kx, (Ns, C), jnp.float32)
    nbhd_mask = jax.random.bernoulli(km, 0.4, (Nt, Ns)).astype(jnp.float32)

    params = {
        "K": xavier_uniform(k1, (H, C, h), gain),
        "Qw": xavier_uniform(k2, (H, Q, h), gain),
        "V": xavier_uniform(k3, (H, C, h), gain),
        # MLP Linear (bias=False); stored already transposed so y = x @ W
        "W": jax.random.uniform(k4, (hidden, hidden), jnp.float32,
                                -1.0 / hidden ** 0.5, 1.0 / hidden ** 0.5),
        "ln0_g": jnp.ones((hidden,), jnp.float32),
        "ln0_b": jnp.zeros((hidden,), jnp.float32),
        "ln1_g": jnp.ones((hidden,), jnp.float32),
        "ln1_b": jnp.zeros((hidden,), jnp.float32),
    }

    out = allset_transformer_block(x_source, nbhd_mask, params, tile_t=512)
    out = jax.block_until_ready(out)

    ref = jax.block_until_ready(reference(x_source, nbhd_mask, params))
    assert out.shape == (Nt, hidden)
    # bf16 MXU operands (incl. bf16 E / expansion matrices) with f32
    # accumulation -> slightly looser tolerance than the pure-f32 reference.
    err = float(jnp.max(jnp.abs(out - ref)))
    assert jnp.allclose(out, ref, rtol=3e-2, atol=4e-2), "max abs err = %f" % err

    print("KERNEL_OK")
</pallas_src>

<mosaic_0001>
module attributes {stable_mosaic.version = 11 : i64} {
  func.func @proj_kernel(%arg0: i32, %arg1: memref<16x8xbf16, #tpu.memory_space<vmem>>, %arg2: memref<8x32xbf16, #tpu.memory_space<vmem>>, %arg3: memref<8x32xbf16, #tpu.memory_space<vmem>>, %arg4: memref<32x4xbf16, #tpu.memory_space<vmem>>, %arg5: memref<4x32xbf16, #tpu.memory_space<vmem>>, %arg6: memref<16x36xbf16, #tpu.memory_space<vmem>>) attributes {dimension_semantics = [#tpu.dimension_semantics<arbitrary>], iteration_bounds = array<i64: 1>, scalar_prefetch = 0 : i64, scratch_operands = 0 : i64, tpu.core_type = #tpu.core_type<tc>, window_params = [{pipeline_mode = #tpu.pipeline_mode<synchronous>, transform_indices = @transform_0, window_bounds = array<i64: 16, 8>}, {pipeline_mode = #tpu.pipeline_mode<synchronous>, transform_indices = @transform_1, window_bounds = array<i64: 8, 32>}, {pipeline_mode = #tpu.pipeline_mode<synchronous>, transform_indices = @transform_2, window_bounds = array<i64: 8, 32>}, {pipeline_mode = #tpu.pipeline_mode<synchronous>, transform_indices = @transform_3, window_bounds = array<i64: 32, 4>}, {pipeline_mode = #tpu.pipeline_mode<synchronous>, transform_indices = @transform_4, window_bounds = array<i64: 4, 32>}, {pipeline_mode = #tpu.pipeline_mode<synchronous>, transform_indices = @transform_5, window_bounds = array<i64: 16, 36>}]} {
    %c0 = arith.constant 0 : index
    %c0_0 = arith.constant 0 : index
    %0 = vector.load %arg1[%c0, %c0_0] : memref<16x8xbf16, #tpu.memory_space<vmem>>, vector<16x8xbf16>
    %c0_1 = arith.constant 0 : index
    %c0_2 = arith.constant 0 : index
    %1 = vector.load %arg2[%c0_1, %c0_2] : memref<8x32xbf16, #tpu.memory_space<vmem>>, vector<8x32xbf16>
    %cst = arith.constant dense<0.000000e+00> : vector<16x32xf32>
    %2 = tpu.matmul %0, %1, %cst {dimension_numbers = #tpu.dot_dimension_numbers<[1], [0], [0], [1], [0, 0, 1, 1], [], []>} : vector<16x8xbf16>, vector<8x32xbf16>, vector<16x32xf32> -> vector<16x32xf32>
    %3 = arith.truncf %2 : vector<16x32xf32> to vector<16x32xbf16>
    %c0_3 = arith.constant 0 : index
    %c0_4 = arith.constant 0 : index
    %4 = vector.load %arg4[%c0_3, %c0_4] : memref<32x4xbf16, #tpu.memory_space<vmem>>, vector<32x4xbf16>
    %cst_5 = arith.constant dense<0.000000e+00> : vector<16x4xf32>
    %5 = tpu.matmul %3, %4, %cst_5 {dimension_numbers = #tpu.dot_dimension_numbers<[1], [0], [0], [1], [0, 0, 1, 1], [], []>} : vector<16x32xbf16>, vector<32x4xbf16>, vector<16x4xf32> -> vector<16x4xf32>
    %cst_6 = arith.constant dense<0xFF800000> : vector<4xf32>
    %6 = vector.multi_reduction <maximumf>, %5, %cst_6 [0] : vector<16x4xf32> to vector<4xf32>
    %7 = vector.shape_cast %6 : vector<4xf32> to vector<1x4xf32>
    %8 = vector.broadcast %7 : vector<1x4xf32> to vector<16x4xf32>
    %9 = arith.subf %5, %8 : vector<16x4xf32>
    %10 = math.exp %9 : vector<16x4xf32>
    %c0_7 = arith.constant 0 : index
    %c0_8 = arith.constant 0 : index
    %11 = vector.load %arg3[%c0_7, %c0_8] : memref<8x32xbf16, #tpu.memory_space<vmem>>, vector<8x32xbf16>
    %cst_9 = arith.constant dense<0.000000e+00> : vector<16x32xf32>
    %12 = tpu.matmul %0, %11, %cst_9 {dimension_numbers = #tpu.dot_dimension_numbers<[1], [0], [0], [1], [0, 0, 1, 1], [], []>} : vector<16x8xbf16>, vector<8x32xbf16>, vector<16x32xf32> -> vector<16x32xf32>
    %13 = arith.truncf %10 : vector<16x4xf32> to vector<16x4xbf16>
    %c0_10 = arith.constant 0 : index
    %c0_11 = arith.constant 0 : index
    %14 = vector.load %arg5[%c0_10, %c0_11] : memref<4x32xbf16, #tpu.memory_space<vmem>>, vector<4x32xbf16>
    %cst_12 = arith.constant dense<0.000000e+00> : vector<16x32xf32>
    %15 = tpu.matmul %13, %14, %cst_12 {dimension_numbers = #tpu.dot_dimension_numbers<[1], [0], [0], [1], [0, 0, 1, 1], [], []>} : vector<16x4xbf16>, vector<4x32xbf16>, vector<16x32xf32> -> vector<16x32xf32>
    %16 = arith.mulf %15, %12 : vector<16x32xf32>
    %17 = arith.truncf %16 : vector<16x32xf32> to vector<16x32xbf16>
    %18 = arith.truncf %10 : vector<16x4xf32> to vector<16x4xbf16>
    %19 = tpu.concatenate %17, %18 in 1 : vector<16x32xbf16>, vector<16x4xbf16> -> vector<16x36xbf16>
    %c0_13 = arith.constant 0 : index
    %c0_14 = arith.constant 0 : index
    %20 = vector.load %arg6[%c0_13, %c0_14] : memref<16x36xbf16, #tpu.memory_space<vmem>>, vector<16x36xbf16>
    tpu.vector_store %arg6[%c0_13, %c0_14], %19 {strides = array<i32>} : memref<16x36xbf16, #tpu.memory_space<vmem>>, vector<16x36xbf16>,
    return
  }
  func.func @transform_0(%arg0: i32) -> (i32, i32) {
    %c0_i32 = arith.constant 0 : i32
    %c0_i32_0 = arith.constant 0 : i32
    %c0_i32_1 = arith.constant 0 : i32
    return %c0_i32, %c0_i32_0 : i32, i32
  }
  func.func @transform_1(%arg0: i32) -> (i32, i32) {
    %c0_i32 = arith.constant 0 : i32
    %c0_i32_0 = arith.constant 0 : i32
    %c0_i32_1 = arith.constant 0 : i32
    return %c0_i32, %c0_i32_0 : i32, i32
  }
  func.func @transform_2(%arg0: i32) -> (i32, i32) {
    %c0_i32 = arith.constant 0 : i32
    %c0_i32_0 = arith.constant 0 : i32
    %c0_i32_1 = arith.constant 0 : i32
    return %c0_i32, %c0_i32_0 : i32, i32
  }
  func.func @transform_3(%arg0: i32) -> (i32, i32) {
    %c0_i32 = arith.constant 0 : i32
    %c0_i32_0 = arith.constant 0 : i32
    %c0_i32_1 = arith.constant 0 : i32
    return %c0_i32, %c0_i32_0 : i32, i32
  }
  func.func @transform_4(%arg0: i32) -> (i32, i32) {
    %c0_i32 = arith.constant 0 : i32
    %c0_i32_0 = arith.constant 0 : i32
    %c0_i32_1 = arith.constant 0 : i32
    return %c0_i32, %c0_i32_0 : i32, i32
  }
  func.func @transform_5(%arg0: i32) -> (i32, i32) {
    %c0_i32 = arith.constant 0 : i32
    %c0_i32_0 = arith.constant 0 : i32
    %c0_i32_1 = arith.constant 0 : i32
    return %c0_i32, %c0_i32_0 : i32, i32
  }
}

</mosaic_0001>

<bundles_post_ra>
// kernel: tpu_custom_call.1
= control target key start
LH: loop header
LB: loop body
LE: loop exit
PB: predicated region body
PF: predicated region fallthrough
CT: control target
= control target key end

     0   :  { %vm34_vm0 = vcmask 1043456   ;;  %v368_v2 = vmov 0.0   ;;  %vm369_vm1 = vmmov 0   ;;  %vm30_vm2 = vcmask 64512   ;;  %s443_s0 = inlined_call_operand.vmem [shape: bf16[16,8], index: 0, kind: input, shape index: {}]   ;;  %s444_s1 = inlined_call_operand.vmem [shape: bf16[8,32], index: 1, kind: input, shape index: {}]   ;;  %s445_s2 = inlined_call_operand.vmem [shape: bf16[8,32], index: 2, kind: input, shape index: {}]   ;;  %s446_s3 = inlined_call_operand.vmem [shape: bf16[32,4], index: 3, kind: input, shape index: {}]   ;;  %s447_s4 = inlined_call_operand.vmem [shape: bf16[4,32], index: 4, kind: input, shape index: {}]   ;;  %s448_s5 = inlined_call_operand.hbm [shape: bf16[16,36], index: 5, kind: output, shape index: {}]  }
   0x1   :  { %v24_v0 = vld [vmem:[%s444_s1] sm:$0xf]  ;;  %305 = vmatprep.subr.bf16.mxu0 %v368_v2  ;;  %311 = vmatprep.subr.bf16.mxu1 %v368_v2 }
   0x2   :  { %v157_v1 = vld [vmem:[%s445_s2] sm:$0xf]  ;;  %v36_v3 = vsel %vm34_vm0, %v24_v0, 0  ;;  %307 = vmatprep.mubr.msk.bf16.mxu0 %vm369_vm1, %v368_v2  ;;  %315 = vmatprep.mubr.msk.bf16.mxu1 %vm369_vm1, %v368_v2 }
   0x3   :  { %v159_v4 = vsel %vm34_vm0, %v157_v1, 0  ;;  %v337_v5 = vld [vmem:[%s443_s0] sm:$0xff]   ;;  %306 = vmatpush3.bf16.msra.mxu0 %v36_v3 }
   0x4   :  { %v338_v6 = vld [vmem:[%s446_s3] sm:$0xff]   ;;  %319 = vmatprep.subr.bf16.mxu0 %v368_v2 }
   0x5   :  { %312 = vmatpush3.bf16.msra.mxu1 %v338_v6 }
   0x6   :  { %10 = vsyncpa [#allocation3], 0  ;;  %308 = vmatmul.mubr.msk.bf16.vlgmr.msra.gmra.mrb[0].mxu0 %vm30_vm2, %v337_v5  ;;  %313 = vmatprep.subr.bf16.mxu1 %v368_v2  ;;  %v339_v7 = vld [vmem:[%s446_s3 + $0x8] sm:$0xff]   ;;  %vm96_vm3 = vcmask 261120   ;;  %v203_v13 = vld [vmem:[%s447_s4] sm:$0x3] }
   0x7   :  { %320 = vmatpush3.bf16.msra.mxu0 %v159_v4  ;;  %321 = vmatprep.mubr.msk.bf16.mxu0 %vm369_vm1, %v368_v2  ;;  %vm207_vm4 = vcmask 1041408   ;;  %vm141_vm5 = vcmask 31744   ;;  %s370_s3 = smov 32   ;;  %s371_s4 = smov [#allocation2]   ;;  %vm268_vm6 = vcmask 289792  }
   0x8   :  { %v209_v14 = vsel %vm207_vm4, %v203_v13, 0  ;;  %s276_s27 = sshll.u32 %s371_s4, 4  ;;  %s277_s27 = int_to_ptr.vmem [resolvable:$true] %s276_s27 }
   0x9   :  { %314 = vmatpush3.bf16.msra.mxu1 %v339_v7  ;;  %s344_s28 = scalar_lea.vmem %s277_s27, 128  ;;  %p349_p1 = scmp.lt.s32.totalorder %s277_s27, %s277_s27 }
   0xa   :  { %325 = vmatprep.subr.bf16.mxu1 %v368_v2  ;;  %p345_p0 = scmp.ne.s32.totalorder %s277_s27, %s344_s28  ;;  %p350_p2 = scmp.lt.s32.totalorder %s344_s28, %s344_s28 }
   0xc   :  { %p351_p3 = por %p350_p2, %p349_p1 }
   0xe   :  { %322 = vmatmul.mubr.msk.bf16.vlgmr.msra.gmra.mrb[4].mxu0 %vm30_vm2, %v337_v5  ;;  %p352_p4 = pnand %p351_p3, %p345_p0 }
  0xd9   :  { %v72_v8 = vpop.f32.mrb[0].mxu0 }
  0xda   :  { %v309_v9 = vpop.f32.mrb[1].mxu0 }
  0xdb   :  { %v75_v10 = vpop.f32.mrb[2].mxu0 }
  0xdc   :  { %v79_v11 = vpack.c.bf16 %v75_v10, %v72_v8  ;;  %v310_v12 = vpop.f32.mrb[3].mxu0 }
  0xde   :  { %316 = vmatmul.mubr.msk.bf16.vlgmr.msra.gmra.mrb[0].mxu1 %vm96_vm3, %v79_v11 }
  0xdf   :  { %327 = vmatprep.mubr.msk.bf16.mxu1 %vm369_vm1, %v368_v2  ;;  %326 = vmatpush3.bf16.msra.mxu1 %v209_v14 }
  0xe1   :  { %v195_v32 = vpop.f32.mrb[4].mxu0 }
  0xe2   :  { %v323_v33 = vpop.f32.mrb[5].mxu0 }
  0xe3   :  { %v198_v34 = vpop.f32.mrb[6].mxu0 }
  0xe4   :  { %v324_v35 = vpop.f32.mrb[7].mxu0 }
 0x1b1   :  { %v134_v15 = vpop.f32.mrb[0].mxu1 }
 0x1b2   :  { %v317_v16 = vpop.f32.mrb[1].mxu1  ;;  %v142_v18 = vsel %vm141_vm5, %v134_v15, -inf }
 0x1b3   :  { %v137_v17 = vpop.f32.mrb[2].mxu1 }
 0x1b4   :  { %v143_v19 = vsel %vm141_vm5, %v137_v17, -inf  ;;  %v318_v20 = vpop.f32.mrb[3].mxu1 }
 0x1b5   :  { %v144_v21 = vmax.f32 %v142_v18, %v143_v19 }
 0x1b7   :  { %v145_v22 = vrot.slane %v144_v21, 4 }
 0x1b9   :  { %v146_v23 = vmax.f32 %v144_v21, %v145_v22 }
 0x1bb   :  { %v147_v24 = vrot.slane %v146_v23, 2 }
 0x1bd   :  { %v148_v25 = vmax.f32 %v146_v23, %v147_v24 }
 0x1bf   :  { %v149_v26 = vrot.slane %v148_v25, 1 }
 0x1c1   :  { %v150_v27 = vmax.f32 %v148_v25, %v149_v26 }
 0x1c3   :  { %v151_v28 = vsub.f32 %v134_v15, %v150_v27  ;;  %v152_v29 = vsub.f32 %v137_v17, %v150_v27 }
 0x1c5   :  { %v153_v30 = vmul.f32 1.442695, %v151_v28  ;;  %v155_v31 = vmul.f32 1.442695, %v152_v29 }
 0x1c7   :  { %340 = vpow2.f32 %v153_v30 }
 0x1c8   :  { %342 = vpow2.f32 %v155_v31 }
 0x1d1   :  { %v341_v36 = vpop.eup %340 }
 0x1d2   :  { %v343_v37 = vpop.eup %342 }
 0x1d3   :  { %v202_v38 = vpack.c.bf16 %v343_v37, %v341_v36 }
 0x1d5   :  { %328 = vmatmul.mubr.msk.bf16.vlgmr.msra.gmra.mrb[4].mxu1 %vm141_vm5, %v202_v38  ;;  %256 = vrot.lane.b32.xlu0 %v202_v38, %s370_s3 }
 0x247   :  { %v257_v46 = vpop.permute.xlu0 %256 }
 0x2a8   :  { %v245_v39 = vpop.f32.mrb[4].mxu1 }
 0x2a9   :  { %v252_v40 = vmul.f32 %v245_v39, %v195_v32  ;;  %v329_v41 = vpop.f32.mrb[5].mxu1 }
 0x2aa   :  { %v248_v42 = vpop.f32.mrb[6].mxu1 }
 0x2ab   :  { %v253_v43 = vmul.f32 %v248_v42, %v198_v34  ;;  %v330_v44 = vpop.f32.mrb[7].mxu1 }
 0x2ad   :  { %v254_v45 = vpack.c.bf16 %v253_v43, %v252_v40 }
 0x2af   :  { %v260_v47 = vsel %vm96_vm3, %v254_v45, %v257_v46 }
 0x2b0   :  { %v294_v48 = vcombine.low %v260_v47, %v260_v47  ;;  %v295_v49 = vcombine.high %v260_v47, %v260_v47 }
 0x2b2   :  { %269 = vst.msk [vmem:[#allocation2] sm:$0xf] %vm268_vm6, %v294_v48  ;;  %270 = vst.msk [vmem:[#allocation2 + $0x4] sm:$0xf] %vm268_vm6, %v295_v49 }
 0x2b3   :  { %355 = shalt.err (!%p352_p4)
}
 0x2b4   :  { %s356_s6 = scalar_lea.hbm %s448_s5, 128 }
 0x2b5   :  { %p357_p5 = scmp.ne.s32.totalorder %s448_s5, %s356_s6  ;;  %p360_p6 = scmp.lt.u32.totalorder %s356_s6, %s448_s5 }
 0x2b7   :  { %p362_p7 = pnand %p360_p6, %p357_p5 }
 0x2b9   :  { %365 = shalt.err (!%p362_p7)
}
 0x2ba   :  { %s372_s11 = smov 64   ;;  %s373_s12 = smov 4  }
 0x2bb   :  { %282 = dma.vmem_to_hbm [thread:$0]  %s277_s27, 128, %s448_s5, [#allocation3], %s372_s11, %s372_s11, %s373_s12  }
 0x2bc   :  { %366 = dma.done.wait [#allocation3], 128  }
 0x2bd   :  { %367 = vsyncadd [#allocation3], 4294967168 }
 0x2be   :  { %286 = vsyncpa [#allocation3], 1 }

</bundles_post_ra>
